<compile_context>
chip_gen: v7x
topology: tpu7x:2x2x1
jax: 0.10.0
libtpu: 0.0.40
codegen_flags: <defaults>
</compile_context>

<pallas_src>
import jax
import jax.numpy as jnp
from jax.experimental import pallas as pl
from jax.experimental.pallas import tpu as pltpu

_BN_EPS = 1e-5


def _toeplitz_conv_weights(w_hwio, W):
    """Expand a 3x3 HWIO kernel into a block-Toeplitz matrix so a 'same' conv
    over the row layout becomes one matmul per output row band:
        out[N*H, W*Cout] = bands[N*H, 3*W*Cin] @ T[3*W*Cin, W*Cout]
    Horizontal zero padding is encoded by the off-diagonal selectors (columns
    falling outside [0, W) simply contribute nothing)."""
    KH, KW, Cin, Cout = w_hwio.shape
    # sel[dx, xo, xi] = 1  iff  xi == xo + dx - KW//2  and 0 <= xi < W
    sel = jnp.stack([jnp.eye(W, dtype=jnp.float32, k=dx - KW // 2)
                     for dx in range(KW)], axis=0)                  # [KW, W, W]
    # t5[dy, xi, ci, xo, co] = sum_dx w[dy, dx, ci, co] * sel[dx, xo, xi]
    t5 = jnp.einsum('yxio,xwp->ypiwo', w_hwio.astype(jnp.float32), sel)
    return t5.reshape(KH * W * Cin, W * Cout)


def _fold_lane_groups(s, C):
    """Exact f32 fold of the W lane-groups of C channels: [r, W*C] -> [r, C].
    Tree-halving (log2(W) adds) when W is a power of two."""
    W = s.shape[1] // C
    if W & (W - 1) == 0:
        while s.shape[1] > C:
            half = s.shape[1] // 2
            s = s[:, :half] + s[:, half:]
        return s
    acc = s[:, :C]
    for w in range(1, W):
        acc = acc + s[:, w * C:(w + 1) * C]
    return acc


def _tile_lane_groups(t, W):
    """Broadcast per-channel rows along lanes: [r, C] -> [r, W*C]
    (log2(W) doublings when W is a power of two)."""
    if W & (W - 1) == 0:
        reps = W
        while reps > 1:
            t = jnp.concatenate([t, t], axis=1)
            reps //= 2
        return t
    return jnp.concatenate([t] * W, axis=1)


def residual_block_kernel(x_ref, t1_ref, g1_ref, b1_ref, t2_ref, g2_ref, b2_ref,
                          o_ref, pad_ref):
    N, Hp2, WC = pad_ref.shape          # WC = W*C (lane dim)
    H = Hp2 - 2
    R, _ = o_ref.shape                  # R = N*H
    C = g1_ref.shape[1]
    W = WC // C
    inv_cnt = 1.0 / float(R * W)

    # --- zero only the top/bottom padding rows once (interior rewritten per conv) ---
    zrow = jnp.zeros((N, 1, WC), pad_ref.dtype)
    pad_ref[:, 0:1, :] = zrow
    pad_ref[:, H + 1:H + 2, :] = zrow

    def conv(t_ref):
        # one fused matmul per conv: [R, 3*WC] (bf16) x [3*WC, WC] (bf16) -> f32
        bands = jnp.concatenate([pad_ref[:, dy:dy + H, :] for dy in range(3)],
                                axis=2)                          # [N, H, 3*WC] bf16
        lhs = bands.reshape(R, 3 * WC)
        return jnp.dot(lhs, t_ref[...], preferred_element_type=jnp.float32)

    def bn(h, g_ref, b_ref):
        # training-mode BN folded to a single FMA (all f32, exact reductions)
        s12 = jnp.concatenate(
            [jnp.sum(h, axis=0, keepdims=True),
             jnp.sum(h * h, axis=0, keepdims=True)], axis=0)     # [2, WC]
        ch = _fold_lane_groups(s12, C) * inv_cnt                 # [2, C]
        mean = ch[0:1, :]
        var = ch[1:2, :] - mean * mean
        scale = g_ref[...] * jax.lax.rsqrt(var + _BN_EPS)        # [1, C]
        shift = b_ref[...] - mean * scale                        # [1, C]
        ss = _tile_lane_groups(jnp.concatenate([scale, shift], axis=0), W)  # [2, WC]
        return h * ss[0:1, :] + ss[1:2, :]

    # --- block 1: conv3x3 -> BN -> ReLU ---
    pad_ref[:, 1:H + 1, :] = x_ref[...].astype(pad_ref.dtype)
    h = jnp.maximum(bn(conv(t1_ref), g1_ref, b1_ref), 0.0)       # [R, WC] f32

    # --- block 2: conv3x3 -> BN ---
    pad_ref[:, 1:H + 1, :] = h.reshape(N, H, WC).astype(pad_ref.dtype)
    h = bn(conv(t2_ref), g2_ref, b2_ref)

    # --- residual add + final ReLU (residual re-read from x_ref here, f32) ---
    o_ref[...] = jnp.maximum(h + x_ref[...].reshape(R, WC), 0.0)


def residual_block(x_nchw, w1_hwio, g1, b1, w2_hwio, g2, b2):
    N, C, H, W = x_nchw.shape
    WC = W * C
    # NCHW -> NHWC -> lane-dense [N, H, W*C] (f32; kept f32 for BN + residual)
    x2d = jnp.transpose(x_nchw, (0, 2, 3, 1)).astype(jnp.float32).reshape(N, H, WC)

    t1 = _toeplitz_conv_weights(w1_hwio, W).astype(jnp.bfloat16)
    t2 = _toeplitz_conv_weights(w2_hwio, W).astype(jnp.bfloat16)

    vmem = pl.BlockSpec(memory_space=pltpu.MemorySpace.VMEM)
    out2d = pl.pallas_call(
        residual_block_kernel,
        out_shape=jax.ShapeDtypeStruct((N * H, WC), jnp.float32),
        in_specs=[vmem] * 7,
        out_specs=vmem,
        scratch_shapes=[pltpu.VMEM((N, H + 2, WC), jnp.bfloat16)],
        compiler_params=pltpu.CompilerParams(vmem_limit_bytes=32 * 1024 * 1024),
    )(x2d, t1,
      g1.reshape(1, C).astype(jnp.float32), b1.reshape(1, C).astype(jnp.float32),
      t2,
      g2.reshape(1, C).astype(jnp.float32), b2.reshape(1, C).astype(jnp.float32))

    return jnp.transpose(out2d.reshape(N, H, W, C), (0, 3, 1, 2))   # -> NCHW


def _reference(x_nchw, w1, g1, b1, w2, g2, b2):
    # Pure-JAX reference of the same forward pass, mirroring the kernel's
    # precision choice (bf16 conv operands, f32 accumulation, f32 BN/residual).
    x = jnp.transpose(x_nchw, (0, 2, 3, 1)).astype(jnp.float32)

    def conv(y, w):
        return jax.lax.conv_general_dilated(
            y.astype(jnp.bfloat16), w.astype(jnp.bfloat16), (1, 1), 'SAME',
            dimension_numbers=('NHWC', 'HWIO', 'NHWC'),
            preferred_element_type=jnp.float32)

    def bn(y, g, b):
        m = jnp.mean(y, axis=(0, 1, 2), keepdims=True)
        v = jnp.mean((y - m) ** 2, axis=(0, 1, 2), keepdims=True)
        return (y - m) * jax.lax.rsqrt(v + _BN_EPS) * g + b

    h = jax.nn.relu(bn(conv(x, w1), g1, b1))
    h = bn(conv(h, w2), g2, b2)
    h = jax.nn.relu(h + x)
    return jnp.transpose(h, (0, 3, 1, 2))


if __name__ == "__main__":
    key = jax.random.PRNGKey(0)
    kx, kw1, kw2, kg1, kb1, kg2, kb2 = jax.random.split(key, 7)

    # Residual add requires in_channels == out_channels in this module.
    N, C, H, W = 2, 4, 16, 16
    x = jax.random.normal(kx, (N, C, H, W), jnp.float32)           # NCHW like PyTorch
    w1 = 0.1 * jax.random.normal(kw1, (3, 3, C, C), jnp.float32)   # HWIO
    w2 = 0.1 * jax.random.normal(kw2, (3, 3, C, C), jnp.float32)   # HWIO
    g1 = 1.0 + 0.1 * jax.random.normal(kg1, (C,), jnp.float32)
    b1 = 0.1 * jax.random.normal(kb1, (C,), jnp.float32)
    g2 = 1.0 + 0.1 * jax.random.normal(kg2, (C,), jnp.float32)
    b2 = 0.1 * jax.random.normal(kb2, (C,), jnp.float32)

    out = jax.block_until_ready(residual_block(x, w1, g1, b1, w2, g2, b2))
    ref = jax.block_until_ready(_reference(x, w1, g1, b1, w2, g2, b2))

    assert out.shape == x.shape and out.dtype == jnp.float32
    max_err = float(jnp.max(jnp.abs(out - ref)))
    # 3e-3 covers accumulation-order / bf16-rounding-boundary differences after
    # BN amplification; layout or indexing bugs would produce O(0.1-1) errors.
    if max_err > 3e-3:
        raise AssertionError(f"Pallas kernel mismatch vs reference: max abs err {max_err}")
    print("KERNEL_OK")
</pallas_src>

<mosaic_0001>
module attributes {stable_mosaic.version = 11 : i64} {
  func.func @residual_block_kernel(%arg0: memref<2x16x64xf32, #tpu.memory_space<vmem>>, %arg1: memref<192x64xbf16, #tpu.memory_space<vmem>>, %arg2: memref<1x4xf32, #tpu.memory_space<vmem>>, %arg3: memref<1x4xf32, #tpu.memory_space<vmem>>, %arg4: memref<192x64xbf16, #tpu.memory_space<vmem>>, %arg5: memref<1x4xf32, #tpu.memory_space<vmem>>, %arg6: memref<1x4xf32, #tpu.memory_space<vmem>>, %arg7: memref<32x64xf32, #tpu.memory_space<vmem>>, %arg8: memref<2x18x64xbf16, #tpu.memory_space<vmem>>) attributes {dimension_semantics = [], scalar_prefetch = 0 : i64, scratch_operands = 1 : i64, tpu.core_type = #tpu.core_type<tc>} {
    %cst = arith.constant 0.000000e+00 : bf16
    %0 = vector.broadcast %cst : bf16 to vector<2x1x64xbf16>
    %c0 = arith.constant 0 : index
    %c0_0 = arith.constant 0 : index
    %c0_1 = arith.constant 0 : index
    %1 = vector.load %arg8[%c0, %c0_0, %c0_1] : memref<2x18x64xbf16, #tpu.memory_space<vmem>>, vector<2x1x64xbf16>
    tpu.vector_store %arg8[%c0, %c0_0, %c0_1], %0 {strides = array<i32>} : memref<2x18x64xbf16, #tpu.memory_space<vmem>>, vector<2x1x64xbf16>,
    %c0_2 = arith.constant 0 : index
    %c17 = arith.constant 17 : index
    %c0_3 = arith.constant 0 : index
    %2 = vector.load %arg8[%c0_2, %c17, %c0_3] : memref<2x18x64xbf16, #tpu.memory_space<vmem>>, vector<2x1x64xbf16>
    tpu.vector_store %arg8[%c0_2, %c17, %c0_3], %0 {strides = array<i32>} : memref<2x18x64xbf16, #tpu.memory_space<vmem>>, vector<2x1x64xbf16>,
    %c0_4 = arith.constant 0 : index
    %c0_5 = arith.constant 0 : index
    %c0_6 = arith.constant 0 : index
    %3 = vector.load %arg0[%c0_4, %c0_5, %c0_6] : memref<2x16x64xf32, #tpu.memory_space<vmem>>, vector<2x16x64xf32>
    %4 = arith.truncf %3 : vector<2x16x64xf32> to vector<2x16x64xbf16>
    %c0_7 = arith.constant 0 : index
    %c1 = arith.constant 1 : index
    %c0_8 = arith.constant 0 : index
    %5 = vector.load %arg8[%c0_7, %c1, %c0_8] : memref<2x18x64xbf16, #tpu.memory_space<vmem>>, vector<2x16x64xbf16>
    tpu.vector_store %arg8[%c0_7, %c1, %c0_8], %4 {strides = array<i32>} : memref<2x18x64xbf16, #tpu.memory_space<vmem>>, vector<2x16x64xbf16>,
    %c0_9 = arith.constant 0 : index
    %c0_10 = arith.constant 0 : index
    %c0_11 = arith.constant 0 : index
    %6 = vector.load %arg8[%c0_9, %c0_10, %c0_11] : memref<2x18x64xbf16, #tpu.memory_space<vmem>>, vector<2x16x64xbf16>
    %c0_12 = arith.constant 0 : index
    %c1_13 = arith.constant 1 : index
    %c0_14 = arith.constant 0 : index
    %7 = vector.load %arg8[%c0_12, %c1_13, %c0_14] : memref<2x18x64xbf16, #tpu.memory_space<vmem>>, vector<2x16x64xbf16>
    %c0_15 = arith.constant 0 : index
    %c2 = arith.constant 2 : index
    %c0_16 = arith.constant 0 : index
    %8 = vector.load %arg8[%c0_15, %c2, %c0_16] : memref<2x18x64xbf16, #tpu.memory_space<vmem>>, vector<2x16x64xbf16>
    %9 = tpu.concatenate %6, %7, %8 in 2 : vector<2x16x64xbf16>, vector<2x16x64xbf16>, vector<2x16x64xbf16> -> vector<2x16x192xbf16>
    %10 = vector.shape_cast %9 : vector<2x16x192xbf16> to vector<32x192xbf16>
    %c0_17 = arith.constant 0 : index
    %c0_18 = arith.constant 0 : index
    %11 = vector.load %arg1[%c0_17, %c0_18] : memref<192x64xbf16, #tpu.memory_space<vmem>>, vector<192x64xbf16>
    %cst_19 = arith.constant dense<0.000000e+00> : vector<32x64xf32>
    %12 = tpu.matmul %10, %11, %cst_19 {dimension_numbers = #tpu.dot_dimension_numbers<[1], [0], [0], [1], [0, 0, 1, 1], [], []>} : vector<32x192xbf16>, vector<192x64xbf16>, vector<32x64xf32> -> vector<32x64xf32>
    %cst_20 = arith.constant dense<0.000000e+00> : vector<64xf32>
    %13 = vector.multi_reduction <add>, %12, %cst_20 [0] : vector<32x64xf32> to vector<64xf32>
    %14 = vector.shape_cast %13 : vector<64xf32> to vector<1x64xf32>
    %15 = arith.mulf %12, %12 : vector<32x64xf32>
    %cst_21 = arith.constant dense<0.000000e+00> : vector<64xf32>
    %16 = vector.multi_reduction <add>, %15, %cst_21 [0] : vector<32x64xf32> to vector<64xf32>
    %17 = vector.shape_cast %16 : vector<64xf32> to vector<1x64xf32>
    %18 = tpu.concatenate %14, %17 in 0 : vector<1x64xf32>, vector<1x64xf32> -> vector<2x64xf32>
    %19 = vector.extract_strided_slice %18 {offsets = [0, 0], sizes = [2, 32], strides = [1, 1]} : vector<2x64xf32> to vector<2x32xf32>
    %20 = vector.extract_strided_slice %18 {offsets = [0, 32], sizes = [2, 32], strides = [1, 1]} : vector<2x64xf32> to vector<2x32xf32>
    %21 = arith.addf %19, %20 : vector<2x32xf32>
    %22 = vector.extract_strided_slice %21 {offsets = [0, 0], sizes = [2, 16], strides = [1, 1]} : vector<2x32xf32> to vector<2x16xf32>
    %23 = vector.extract_strided_slice %21 {offsets = [0, 16], sizes = [2, 16], strides = [1, 1]} : vector<2x32xf32> to vector<2x16xf32>
    %24 = arith.addf %22, %23 : vector<2x16xf32>
    %25 = vector.extract_strided_slice %24 {offsets = [0, 0], sizes = [2, 8], strides = [1, 1]} : vector<2x16xf32> to vector<2x8xf32>
    %26 = vector.extract_strided_slice %24 {offsets = [0, 8], sizes = [2, 8], strides = [1, 1]} : vector<2x16xf32> to vector<2x8xf32>
    %27 = arith.addf %25, %26 : vector<2x8xf32>
    %28 = vector.extract_strided_slice %27 {offsets = [0, 0], sizes = [2, 4], strides = [1, 1]} : vector<2x8xf32> to vector<2x4xf32>
    %29 = vector.extract_strided_slice %27 {offsets = [0, 4], sizes = [2, 4], strides = [1, 1]} : vector<2x8xf32> to vector<2x4xf32>
    %30 = arith.addf %28, %29 : vector<2x4xf32>
    %cst_22 = arith.constant 0.001953125 : f32
    %31 = vector.broadcast %cst_22 : f32 to vector<2x4xf32>
    %32 = arith.mulf %30, %31 : vector<2x4xf32>
    %33 = vector.extract_strided_slice %32 {offsets = [0, 0], sizes = [1, 4], strides = [1, 1]} : vector<2x4xf32> to vector<1x4xf32>
    %34 = vector.extract_strided_slice %32 {offsets = [1, 0], sizes = [1, 4], strides = [1, 1]} : vector<2x4xf32> to vector<1x4xf32>
    %35 = arith.mulf %33, %33 : vector<1x4xf32>
    %36 = arith.subf %34, %35 : vector<1x4xf32>
    %c0_23 = arith.constant 0 : index
    %c0_24 = arith.constant 0 : index
    %37 = vector.load %arg2[%c0_23, %c0_24] : memref<1x4xf32, #tpu.memory_space<vmem>>, vector<1x4xf32>
    %cst_25 = arith.constant 9.99999974E-6 : f32
    %38 = vector.broadcast %cst_25 : f32 to vector<1x4xf32>
    %39 = arith.addf %36, %38 : vector<1x4xf32>
    %40 = math.rsqrt %39 : vector<1x4xf32>
    %41 = arith.mulf %37, %40 : vector<1x4xf32>
    %c0_26 = arith.constant 0 : index
    %c0_27 = arith.constant 0 : index
    %42 = vector.load %arg3[%c0_26, %c0_27] : memref<1x4xf32, #tpu.memory_space<vmem>>, vector<1x4xf32>
    %43 = arith.mulf %33, %41 : vector<1x4xf32>
    %44 = arith.subf %42, %43 : vector<1x4xf32>
    %45 = tpu.concatenate %41, %44 in 0 : vector<1x4xf32>, vector<1x4xf32> -> vector<2x4xf32>
    %46 = tpu.concatenate %45, %45 in 1 : vector<2x4xf32>, vector<2x4xf32> -> vector<2x8xf32>
    %47 = tpu.concatenate %46, %46 in 1 : vector<2x8xf32>, vector<2x8xf32> -> vector<2x16xf32>
    %48 = tpu.concatenate %47, %47 in 1 : vector<2x16xf32>, vector<2x16xf32> -> vector<2x32xf32>
    %49 = tpu.concatenate %48, %48 in 1 : vector<2x32xf32>, vector<2x32xf32> -> vector<2x64xf32>
    %50 = vector.extract_strided_slice %49 {offsets = [0, 0], sizes = [1, 64], strides = [1, 1]} : vector<2x64xf32> to vector<1x64xf32>
    %51 = vector.broadcast %50 : vector<1x64xf32> to vector<32x64xf32>
    %52 = arith.mulf %12, %51 : vector<32x64xf32>
    %53 = vector.extract_strided_slice %49 {offsets = [1, 0], sizes = [1, 64], strides = [1, 1]} : vector<2x64xf32> to vector<1x64xf32>
    %54 = vector.broadcast %53 : vector<1x64xf32> to vector<32x64xf32>
    %55 = arith.addf %52, %54 : vector<32x64xf32>
    %cst_28 = arith.constant 0.000000e+00 : f32
    %56 = vector.broadcast %cst_28 : f32 to vector<32x64xf32>
    %57 = arith.maximumf %55, %56 : vector<32x64xf32>
    %58 = vector.shape_cast %57 : vector<32x64xf32> to vector<2x16x64xf32>
    %59 = arith.truncf %58 : vector<2x16x64xf32> to vector<2x16x64xbf16>
    %c0_29 = arith.constant 0 : index
    %c1_30 = arith.constant 1 : index
    %c0_31 = arith.constant 0 : index
    %60 = vector.load %arg8[%c0_29, %c1_30, %c0_31] : memref<2x18x64xbf16, #tpu.memory_space<vmem>>, vector<2x16x64xbf16>
    tpu.vector_store %arg8[%c0_29, %c1_30, %c0_31], %59 {strides = array<i32>} : memref<2x18x64xbf16, #tpu.memory_space<vmem>>, vector<2x16x64xbf16>,
    %c0_32 = arith.constant 0 : index
    %c0_33 = arith.constant 0 : index
    %c0_34 = arith.constant 0 : index
    %61 = vector.load %arg8[%c0_32, %c0_33, %c0_34] : memref<2x18x64xbf16, #tpu.memory_space<vmem>>, vector<2x16x64xbf16>
    %c0_35 = arith.constant 0 : index
    %c1_36 = arith.constant 1 : index
    %c0_37 = arith.constant 0 : index
    %62 = vector.load %arg8[%c0_35, %c1_36, %c0_37] : memref<2x18x64xbf16, #tpu.memory_space<vmem>>, vector<2x16x64xbf16>
    %c0_38 = arith.constant 0 : index
    %c2_39 = arith.constant 2 : index
    %c0_40 = arith.constant 0 : index
    %63 = vector.load %arg8[%c0_38, %c2_39, %c0_40] : memref<2x18x64xbf16, #tpu.memory_space<vmem>>, vector<2x16x64xbf16>
    %64 = tpu.concatenate %61, %62, %63 in 2 : vector<2x16x64xbf16>, vector<2x16x64xbf16>, vector<2x16x64xbf16> -> vector<2x16x192xbf16>
    %65 = vector.shape_cast %64 : vector<2x16x192xbf16> to vector<32x192xbf16>
    %c0_41 = arith.constant 0 : index
    %c0_42 = arith.constant 0 : index
    %66 = vector.load %arg4[%c0_41, %c0_42] : memref<192x64xbf16, #tpu.memory_space<vmem>>, vector<192x64xbf16>
    %cst_43 = arith.constant dense<0.000000e+00> : vector<32x64xf32>
    %67 = tpu.matmul %65, %66, %cst_43 {dimension_numbers = #tpu.dot_dimension_numbers<[1], [0], [0], [1], [0, 0, 1, 1], [], []>} : vector<32x192xbf16>, vector<192x64xbf16>, vector<32x64xf32> -> vector<32x64xf32>
    %cst_44 = arith.constant dense<0.000000e+00> : vector<64xf32>
    %68 = vector.multi_reduction <add>, %67, %cst_44 [0] : vector<32x64xf32> to vector<64xf32>
    %69 = vector.shape_cast %68 : vector<64xf32> to vector<1x64xf32>
    %70 = arith.mulf %67, %67 : vector<32x64xf32>
    %cst_45 = arith.constant dense<0.000000e+00> : vector<64xf32>
    %71 = vector.multi_reduction <add>, %70, %cst_45 [0] : vector<32x64xf32> to vector<64xf32>
    %72 = vector.shape_cast %71 : vector<64xf32> to vector<1x64xf32>
    %73 = tpu.concatenate %69, %72 in 0 : vector<1x64xf32>, vector<1x64xf32> -> vector<2x64xf32>
    %74 = vector.extract_strided_slice %73 {offsets = [0, 0], sizes = [2, 32], strides = [1, 1]} : vector<2x64xf32> to vector<2x32xf32>
    %75 = vector.extract_strided_slice %73 {offsets = [0, 32], sizes = [2, 32], strides = [1, 1]} : vector<2x64xf32> to vector<2x32xf32>
    %76 = arith.addf %74, %75 : vector<2x32xf32>
    %77 = vector.extract_strided_slice %76 {offsets = [0, 0], sizes = [2, 16], strides = [1, 1]} : vector<2x32xf32> to vector<2x16xf32>
    %78 = vector.extract_strided_slice %76 {offsets = [0, 16], sizes = [2, 16], strides = [1, 1]} : vector<2x32xf32> to vector<2x16xf32>
    %79 = arith.addf %77, %78 : vector<2x16xf32>
    %80 = vector.extract_strided_slice %79 {offsets = [0, 0], sizes = [2, 8], strides = [1, 1]} : vector<2x16xf32> to vector<2x8xf32>
    %81 = vector.extract_strided_slice %79 {offsets = [0, 8], sizes = [2, 8], strides = [1, 1]} : vector<2x16xf32> to vector<2x8xf32>
    %82 = arith.addf %80, %81 : vector<2x8xf32>
    %83 = vector.extract_strided_slice %82 {offsets = [0, 0], sizes = [2, 4], strides = [1, 1]} : vector<2x8xf32> to vector<2x4xf32>
    %84 = vector.extract_strided_slice %82 {offsets = [0, 4], sizes = [2, 4], strides = [1, 1]} : vector<2x8xf32> to vector<2x4xf32>
    %85 = arith.addf %83, %84 : vector<2x4xf32>
    %cst_46 = arith.constant 0.001953125 : f32
    %86 = vector.broadcast %cst_46 : f32 to vector<2x4xf32>
    %87 = arith.mulf %85, %86 : vector<2x4xf32>
    %88 = vector.extract_strided_slice %87 {offsets = [0, 0], sizes = [1, 4], strides = [1, 1]} : vector<2x4xf32> to vector<1x4xf32>
    %89 = vector.extract_strided_slice %87 {offsets = [1, 0], sizes = [1, 4], strides = [1, 1]} : vector<2x4xf32> to vector<1x4xf32>
    %90 = arith.mulf %88, %88 : vector<1x4xf32>
    %91 = arith.subf %89, %90 : vector<1x4xf32>
    %c0_47 = arith.constant 0 : index
    %c0_48 = arith.constant 0 : index
    %92 = vector.load %arg5[%c0_47, %c0_48] : memref<1x4xf32, #tpu.memory_space<vmem>>, vector<1x4xf32>
    %cst_49 = arith.constant 9.99999974E-6 : f32
    %93 = vector.broadcast %cst_49 : f32 to vector<1x4xf32>
    %94 = arith.addf %91, %93 : vector<1x4xf32>
    %95 = math.rsqrt %94 : vector<1x4xf32>
    %96 = arith.mulf %92, %95 : vector<1x4xf32>
    %c0_50 = arith.constant 0 : index
    %c0_51 = arith.constant 0 : index
    %97 = vector.load %arg6[%c0_50, %c0_51] : memref<1x4xf32, #tpu.memory_space<vmem>>, vector<1x4xf32>
    %98 = arith.mulf %88, %96 : vector<1x4xf32>
    %99 = arith.subf %97, %98 : vector<1x4xf32>
    %100 = tpu.concatenate %96, %99 in 0 : vector<1x4xf32>, vector<1x4xf32> -> vector<2x4xf32>
    %101 = tpu.concatenate %100, %100 in 1 : vector<2x4xf32>, vector<2x4xf32> -> vector<2x8xf32>
    %102 = tpu.concatenate %101, %101 in 1 : vector<2x8xf32>, vector<2x8xf32> -> vector<2x16xf32>
    %103 = tpu.concatenate %102, %102 in 1 : vector<2x16xf32>, vector<2x16xf32> -> vector<2x32xf32>
    %104 = tpu.concatenate %103, %103 in 1 : vector<2x32xf32>, vector<2x32xf32> -> vector<2x64xf32>
    %105 = vector.extract_strided_slice %104 {offsets = [0, 0], sizes = [1, 64], strides = [1, 1]} : vector<2x64xf32> to vector<1x64xf32>
    %106 = vector.broadcast %105 : vector<1x64xf32> to vector<32x64xf32>
    %107 = arith.mulf %67, %106 : vector<32x64xf32>
    %108 = vector.extract_strided_slice %104 {offsets = [1, 0], sizes = [1, 64], strides = [1, 1]} : vector<2x64xf32> to vector<1x64xf32>
    %109 = vector.broadcast %108 : vector<1x64xf32> to vector<32x64xf32>
    %110 = arith.addf %107, %109 : vector<32x64xf32>
    %c0_52 = arith.constant 0 : index
    %c0_53 = arith.constant 0 : index
    %c0_54 = arith.constant 0 : index
    %111 = vector.load %arg0[%c0_52, %c0_53, %c0_54] : memref<2x16x64xf32, #tpu.memory_space<vmem>>, vector<2x16x64xf32>
    %112 = vector.shape_cast %111 : vector<2x16x64xf32> to vector<32x64xf32>
    %113 = arith.addf %110, %112 : vector<32x64xf32>
    %cst_55 = arith.constant 0.000000e+00 : f32
    %114 = vector.broadcast %cst_55 : f32 to vector<32x64xf32>
    %115 = arith.maximumf %113, %114 : vector<32x64xf32>
    %c0_56 = arith.constant 0 : index
    %c0_57 = arith.constant 0 : index
    %116 = vector.load %arg7[%c0_56, %c0_57] : memref<32x64xf32, #tpu.memory_space<vmem>>, vector<32x64xf32>
    tpu.vector_store %arg7[%c0_56, %c0_57], %115 {strides = array<i32>} : memref<32x64xf32, #tpu.memory_space<vmem>>, vector<32x64xf32>,
    return
  }
}

</mosaic_0001>

<bundles_post_ra>
// kernel: tpu_custom_call.1
= control target key start
LH: loop header
LB: loop body
LE: loop exit
PB: predicated region body
PF: predicated region fallthrough
CT: control target
= control target key end

     0   :  { %vm28_vm0 = vcmask 516096   ;;  %vm29_vm1 = vsmask.f32 256  ;;  %v31_v0 = vld [vmem:[#allocation2] sm:$0x1]  ;;  %vm103_vm6 = vcmask 519168   ;;  %s1451_s0 = inlined_call_operand.vmem [shape: f32[2,16,64], index: 0, kind: input, shape index: {}]   ;;  %s1452_s1 = inlined_call_operand.vmem [shape: bf16[192,64], index: 1, kind: input, shape index: {}]   ;;  %s1453_s2 = inlined_call_operand.vmem [shape: f32[1,4], index: 2, kind: input, shape index: {}]   ;;  %s1454_s3 = inlined_call_operand.vmem [shape: f32[1,4], index: 3, kind: input, shape index: {}]   ;;  %s1455_s4 = inlined_call_operand.vmem [shape: bf16[192,64], index: 4, kind: input, shape index: {}]   ;;  %s1456_s5 = inlined_call_operand.vmem [shape: f32[1,4], index: 5, kind: input, shape index: {}]   ;;  %s1457_s6 = inlined_call_operand.vmem [shape: f32[1,4], index: 6, kind: input, shape index: {}]   ;;  %s1458_s7 = inlined_call_operand.hbm [shape: f32[32,64], index: 7, kind: output, shape index: {}]  }
   0x1   :  { %v45_v1 = vld [vmem:[%s1451_s0] sm:$0xff]  ;;  %vm1111_vm2 = vmand %vm28_vm0, %vm29_vm1  ;;  %vm37_vm3 = vsmask.f32 7938  ;;  %v39_v3 = vld [vmem:[#allocation2 + $0x8] sm:$0x1]  ;;  %v1054_v27 = vmov 0  }
   0x2   :  { %v46_v4 = vld [vmem:[%s1451_s0 + $0x8] sm:$0xff]  ;;  %v968_v5 = vpack.c.bf16 %v45_v1, %v45_v1  ;;  %v32_v6 = vsel %vm1111_vm2, 0, %v31_v0  ;;  %vm1121_vm4 = vmand %vm28_vm0, %vm37_vm3  ;;  %vm61_vm5 = vsmask.f32 4368  ;;  %v1130_v13 = vld [vmem:[%s1451_s0 + $0x10] sm:$0xff]  ;;  %295 = vmatprep.subr.bf16.mxu0 %v1054_v27  ;;  %715 = vmatprep.subr.bf16.mxu1 %v1054_v27  ;;  %vm179_vm10 = vcmask 1046528  }
   0x3   :  { %v969_v8 = vpack.c.bf16 %v46_v4, %v46_v4  ;;  %33 = vst [vmem:[#allocation2] sm:$0x1] %v32_v6  ;;  %v40_v9 = vsel %vm1121_vm4, 0, %v39_v3  ;;  %v34_v12 = vld [vmem:[#allocation2 + $0xc] sm:$0x1]  ;;  %v1137_v18 = vld [vmem:[%s1451_s0 + $0x18] sm:$0xff]  ;;  %v970_v19 = vpack.c.bf16 %v1130_v13, %v1130_v13  ;;  %vm1152_vm7 = vmor %vm29_vm1, %vm61_vm5 }
   0x4   :  { %v64_v10 = vshrl.u32 %v968_v5, 16  ;;  %v67_v11 = vshll.u32 %v968_v5, 16  ;;  %41 = vst [vmem:[#allocation2 + $0x8] sm:$0x1] %v40_v9  ;;  %v35_v16 = vsel %vm1111_vm2, 0, %v34_v12  ;;  %v971_v22 = vpack.c.bf16 %v1137_v18, %v1137_v18  ;;  %v993_v23 = vld [vmem:[%s1452_s1] sm:$0xff]   ;;  %vm1161_vm8 = vmand %vm103_vm6, %vm37_vm3 }
   0x5   :  { %v72_v14 = vshrl.u32 %v969_v8, 16  ;;  %v75_v15 = vshll.u32 %v969_v8, 16  ;;  %v42_v17 = vld [vmem:[#allocation2 + $0x14] sm:$0x1]  ;;  %36 = vst [vmem:[#allocation2 + $0xc] sm:$0x1] %v35_v16  ;;  %296 = vmatpush1.bf16.msra.mxu0 %v993_v23 }
   0x6   :  { %v66_v20 = vrot.slane %v64_v10, 7  ;;  %v43_v21 = vsel %vm1121_vm4, 0, %v42_v17  ;;  %v81_v25 = vshrl.u32 %v970_v19, 16  ;;  %v84_v26 = vshll.u32 %v970_v19, 16  ;;  %v994_v33 = vld [vmem:[%s1452_s1 + $0x8] sm:$0xff]   ;;  %297 = vmatprep.subr.bf16.mxu0 %v1054_v27  ;;  %v995_v47 = vld [vmem:[%s1452_s1 + $0x10] sm:$0xff]  }
   0x7   :  { %v74_v24 = vrot.slane %v72_v14, 7  ;;  %44 = vst [vmem:[#allocation2 + $0x14] sm:$0x1] %v43_v21  ;;  %v89_v31 = vshrl.u32 %v971_v22, 16  ;;  %v92_v32 = vshll.u32 %v971_v22, 16  ;;  %v996_v54 = vld [vmem:[%s1452_s1 + $0x18] sm:$0xff]  }
   0x8   :  { %v69_v29 = vor.u32 %v67_v11, %v66_v20  ;;  %v70_v30 = vrot.slane %v66_v20, 4  ;;  %v83_v37 = vrot.slane %v81_v25, 7  ;;  %vm144_vm9 = vsmask.f32 7424  ;;  %v997_v56 = vld [vmem:[%s1452_s1 + $0x20] sm:$0xff]   ;;  %v998_v5 = vld [vmem:[%s1452_s1 + $0x28] sm:$0xff]  }
   0x9   :  { %v77_v34 = vor.u32 %v75_v15, %v74_v24  ;;  %v79_v35 = vrot.slane %v74_v24, 4  ;;  %v91_v38 = vrot.slane %v89_v31, 7  ;;  %298 = vmatpush1.bf16.msra.mxu0 %v994_v33  ;;  %vm186_vm11 = vcmask 523264   ;;  %v999_v19 = vld [vmem:[%s1452_s1 + $0x30] sm:$0xff]   ;;  %s1055_s23 = smov 64   ;;  %v1000_v23 = vld [vmem:[%s1452_s1 + $0x38] sm:$0xff]  }
   0xa   :  { %v105_v40 = vld [vmem:[#allocation2] sm:$0xf]  ;;  %v86_v41 = vor.u32 %v84_v26, %v83_v37  ;;  %v87_v42 = vrot.slane %v83_v37, 4  ;;  %299 = vmatprep.subr.bf16.mxu0 %v1054_v27 }
   0xb   :  { %v78_v39 = vsel %vm1152_vm7, %v70_v30, %v77_v34  ;;  %v106_v43 = vsel %vm1161_vm8, %v69_v29, %v105_v40  ;;  %v110_v44 = vld [vmem:[#allocation2 + $0x8] sm:$0x1]  ;;  %v94_v45 = vor.u32 %v92_v32, %v91_v38  ;;  %v96_v46 = vrot.slane %v91_v38, 4 }
   0xc   :  { %109 = vst.msk [vmem:[#allocation2 + $0x4] sm:$0xf] %vm103_vm6, %v78_v39  ;;  %107 = vst [vmem:[#allocation2] sm:$0xf] %v106_v43  ;;  %v111_v48 = vsel %vm1111_vm2, %v79_v35, %v110_v44  ;;  %v113_v49 = vld [vmem:[#allocation2 + $0xc] sm:$0xf] }
   0xd   :  { %112 = vst [vmem:[#allocation2 + $0x8] sm:$0x1] %v111_v48  ;;  %v95_v50 = vsel %vm1152_vm7, %v87_v42, %v94_v45  ;;  %v114_v51 = vsel %vm1161_vm8, %v86_v41, %v113_v49  ;;  %300 = vmatpush1.bf16.msra.mxu0 %v995_v47 }
   0xe   :  { %v117_v52 = vld [vmem:[#allocation2 + $0x14] sm:$0x1]  ;;  %115 = vst [vmem:[#allocation2 + $0xc] sm:$0xf] %v114_v51  ;;  %116 = vst.msk [vmem:[#allocation2 + $0x10] sm:$0xf] %vm103_vm6, %v95_v50  ;;  %301 = vmatprep.subr.bf16.mxu0 %v1054_v27 }
   0xf   :  { %v118_v53 = vsel %vm1111_vm2, %v96_v46, %v117_v52 }
  0x10   :  { %119 = vst [vmem:[#allocation2 + $0x14] sm:$0x1] %v118_v53 }
  0x11   :  { %302 = vmatpush1.bf16.msra.mxu0 %v996_v54 }
  0x12   :  { %303 = vmatprep.subr.bf16.mxu0 %v1054_v27 }
  0x13   :  { %v121_v55 = vld [vmem:[#allocation2 + $0x4] sm:$0xf]  ;;  %v120_v57 = vld [vmem:[#allocation2] sm:$0xf] }
  0x14   :  { %v924_v58 = vcombine.low %v120_v57, %v121_v55  ;;  %v990_v59 = vld [vmem:[#allocation2 + $0x8] ss:$0 sps:$4 sm:$0x11]   ;;  %v126_v62 = vld [vmem:[#allocation2] sm:$0xe] }
  0x15   :  { %v122_v60 = vld [vmem:[#allocation2 + $0xc] sm:$0xf]  ;;  %v123_v61 = vld [vmem:[#allocation2 + $0x10] sm:$0xf]  ;;  %v153_v1 = vshll.u32 %v990_v59, 16  ;;  %304 = vmatpush1.bf16.msra.mxu0 %v997_v56  ;;  %v928_v6 = vcombine.low %v126_v62, %v121_v55  ;;  %v181_v7 = vrot.slane %v990_v59, 1 }
  0x16   :  { %v146_v63 = vshrl.u32 %v924_v58, 16  ;;  %v148_v0 = vshll.u32 %v924_v58, 16  ;;  %v925_v3 = vcombine.low %v122_v60, %v123_v61  ;;  %305 = vmatprep.subr.bf16.mxu0 %v1054_v27 }
  0x17   :  { %v992_v4 = vld [vmem:[#allocation2 + $0x14] ss:$0 sps:$4 sm:$0x11]   ;;  %v155_v9 = vrot.slane %v153_v1, 1  ;;  %v180_v14 = vrot.slane %v928_v6, 1 }
  0x18   :  { %v150_v8 = vrot.slane %v148_v0, 1  ;;  %v158_v10 = vshrl.u32 %v925_v3, 16  ;;  %v160_v11 = vshll.u32 %v925_v3, 16  ;;  %v165_v12 = vshll.u32 %v992_v4, 16 }
  0x19   :  { %306 = vmatpush1.bf16.msra.mxu0 %v998_v5  ;;  %v182_v20 = vsel %vm179_vm10, %v180_v14, %v181_v7 }
  0x1a   :  { %v151_v15 = vor.u32 %v150_v8, %v146_v63  ;;  %v162_v16 = vrot.slane %v160_v11, 1  ;;  %v167_v17 = vrot.slane %v165_v12, 1  ;;  %307 = vmatprep.subr.bf16.mxu0 %v1054_v27  ;;  %942 = vmatprep.mubr.msk.bf16.mxu0 %vm186_vm11, %v182_v20 }
  0x1c   :  { %v156_v21 = vsel %vm144_vm9, %v151_v15, %v155_v9  ;;  %v163_v22 = vor.u32 %v162_v16, %v158_v10 }
  0x1d   :  { %169 = vrot.lane.b32.xlu0 %v156_v21, %s1055_s23  ;;  %308 = vmatpush1.bf16.msra.mxu0 %v999_v19 }
  0x1e   :  { %v168_v24 = vsel %vm144_vm9, %v163_v22, %v167_v17  ;;  %309 = vmatprep.subr.bf16.mxu0 %v1054_v27 }
  0x21   :  { %171 = vrot.lane.b32.xlu0 %v168_v24, %s1055_s23 }
  0x22   :  { %12 = vsyncpa [#allocation4], 0  ;;  %310 = vmatpush1.bf16.msra.mxu0 %v1000_v23  ;;  %v1001_v25 = vld [vmem:[%s1452_s1 + $0x40] sm:$0xff]   ;;  %v1002_v26 = vld [vmem:[%s1452_s1 + $0x48] sm:$0xff]   ;;  %v184_v34 = vrot.slane %v992_v4, 1  ;;  %vm374_vm12 = vcmask 1040384  }
  0x23   :  { %311 = vmatprep.subr.bf16.mxu0 %v1054_v27  ;;  %v1003_v29 = vld [vmem:[%s1452_s1 + $0x50] sm:$0xff]   ;;  %v1004_v30 = vld [vmem:[%s1452_s1 + $0x58] sm:$0xff]   ;;  %v127_v31 = vld [vmem:[#allocation2 + $0xc] sm:$0xe]  ;;  %s1056_s1 = smov 96   ;;  %s1057_s11 = smov 112  }
  0x24   :  { %v929_v32 = vcombine.low %v127_v31, %v123_v61  ;;  %s1058_s12 = smov 120   ;;  %s1059_s13 = smov 124   ;;  %vm437_vm13 = vcmask 31744   ;;  %vm443_vm14 = vcmask 64512   ;;  %vm449_vm15 = vcmask 130048  }
  0x25   :  { %s1061_s18 = smov 4   ;;  %s1064_s19 = smov 32   ;;  %vm455_vm0 = vcmask 261120  }
  0x26   :  { %312 = vmatpush1.bf16.msra.mxu0 %v1001_v25  ;;  %v183_v33 = vrot.slane %v929_v32, 1 }
  0x27   :  { %313 = vmatprep.subr.bf16.mxu0 %v1054_v27 }
  0x28   :  { %v185_v37 = vsel %vm179_vm10, %v183_v33, %v184_v34  ;;  %v1060_v34 = vmov 1966171168  }
  0x2a   :  { %314 = vmatpush1.bf16.msra.mxu0 %v1002_v26 }
  0x2b   :  { %315 = vmatprep.subr.bf16.mxu0 %v1054_v27 }
  0x2e   :  { %316 = vmatpush1.bf16.msra.mxu0 %v1003_v29 }
  0x2f   :  { %317 = vmatprep.subr.bf16.mxu0 %v1054_v27 }
  0x32   :  { %318 = vmatpush1.bf16.msra.mxu0 %v1004_v30 }
  0x8f   :  { %v170_v35 = vpop.permute.xlu0 %169 }
  0x90   :  { %v188_v38 = vsel %vm186_vm11, %v924_v58, %v170_v35  ;;  %v407_v35 = vunpack.c.l.s4 %v1060_v34 }
  0x91   :  { %328 = vmatmul.mubr.bf16.vlgmr.msra.gmra.mrb[0].mxu0 %v188_v38 }
  0x92   :  { %943 = vmatprep.mubr.msk.bf16.mxu0 %vm186_vm11, %v185_v37  ;;  %v409_v37 = vlaneseq  ;;  %v408_v38 = vunpack.c.0.s8 %v407_v35 }
  0x93   :  { %v172_v39 = vpop.permute.xlu0 %171 }
  0x94   :  { %v191_v40 = vsel %vm186_vm11, %v925_v3, %v172_v39  ;;  %v1263_v39 = vshrl.u32 %v409_v37, 7 }
  0x99   :  { %336 = vmatmul.mubr.bf16.gmra.mrb[4].mxu0 %v191_v40  ;;  %v1266_v40 = vsub.s32 %v408_v38, %v1263_v39 }
 0x164   :  { %v1230_v41 = vpop.f32.mrb[0].mxu0 }
 0x165   :  { %v357_v42 = vmul.f32 %v1230_v41, %v1230_v41  ;;  %v331_v43 = vpop.f32.mrb[1].mxu0  ;;  %v344_v45 = vsel %vm186_vm11, %v1230_v41, 0.0 }
 0x166   :  { %v1234_v44 = vpop.f32.mrb[2].mxu0 }
 0x167   :  { %v345_v46 = vsel %vm186_vm11, %v1234_v44, 0.0  ;;  %v358_v47 = vmul.f32 %v1234_v44, %v1234_v44  ;;  %v334_v48 = vpop.f32.mrb[3].mxu0  ;;  %v361_v50 = vsel %vm186_vm11, %v357_v42, 0.0 }
 0x168   :  { %v346_v49 = vadd.f32 %v345_v46, %v344_v45  ;;  %v402_v46 = vld [vmem:[%s1453_s2] sm:$0x1]  ;;  %s1062_s2 = smov 8  }
 0x169   :  { %v362_v51 = vsel %vm186_vm11, %v358_v47, 0.0 }
 0x16a   :  { %v363_v52 = vadd.f32 %v362_v51, %v361_v50  ;;  %v1277_v51 = vsub.s32 0, %v1263_v39 }
 0x16c   :  { %v1244_v53 = vpop.f32.mrb[4].mxu0 }
 0x16d   :  { %v347_v54 = vsel %vm186_vm11, %v1244_v53, 0.0  ;;  %v359_v55 = vmul.f32 %v1244_v53, %v1244_v53  ;;  %v339_v56 = vpop.f32.mrb[5].mxu0 }
 0x16e   :  { %v348_v57 = vadd.f32 %v347_v54, %v346_v49  ;;  %v1250_v58 = vpop.f32.mrb[6].mxu0  ;;  %v423_v49 = vld [vmem:[%s1454_s3] sm:$0x1]  ;;  %s1063_s3 = smov 16  }
 0x16f   :  { %v364_v59 = vsel %vm186_vm11, %v359_v55, 0.0  ;;  %v349_v60 = vsel %vm186_vm11, %v1250_v58, 0.0  ;;  %v360_v61 = vmul.f32 %v1250_v58, %v1250_v58  ;;  %v342_v62 = vpop.f32.mrb[7].mxu0 }
 0x170   :  { %v365_v63 = vadd.f32 %v364_v59, %v363_v52  ;;  %v350_v0 = vadd.f32 %v349_v60, %v348_v57 }
 0x171   :  { %v366_v1 = vsel %vm186_vm11, %v360_v61, 0.0 }
 0x172   :  { %v351_v3 = vrot.slane %v350_v0, 4  ;;  %v367_v4 = vadd.f32 %v366_v1, %v365_v63  ;;  %v1011_v63 = vld [vmem:[%s1455_s4] sm:$0xff]   ;;  %v1013_v1 = vld [vmem:[%s1455_s4 + $0x10] sm:$0xff]  }
 0x173   :  { %716 = vmatpush1.bf16.msra.mxu1 %v1011_v63 }
 0x174   :  { %v352_v5 = vadd.f32 %v351_v3, %v350_v0  ;;  %v368_v6 = vrot.slane %v367_v4, 4  ;;  %v1012_v0 = vld [vmem:[%s1455_s4 + $0x8] sm:$0xff]   ;;  %717 = vmatprep.subr.bf16.mxu1 %v1054_v27  ;;  %v1014_v3 = vld [vmem:[%s1455_s4 + $0x18] sm:$0xff]  }
 0x176   :  { %v353_v7 = vrot.slane %v352_v5, 2  ;;  %v369_v8 = vadd.f32 %v368_v6, %v367_v4  ;;  %v1015_v4 = vld [vmem:[%s1455_s4 + $0x20] sm:$0xff]   ;;  %v1017_v6 = vld [vmem:[%s1455_s4 + $0x30] sm:$0xff]  }
 0x177   :  { %718 = vmatpush1.bf16.msra.mxu1 %v1012_v0 }
 0x178   :  { %v354_v9 = vadd.f32 %v353_v7, %v352_v5  ;;  %v370_v10 = vrot.slane %v369_v8, 2  ;;  %719 = vmatprep.subr.bf16.mxu1 %v1054_v27  ;;  %v1016_v5 = vld [vmem:[%s1455_s4 + $0x28] sm:$0xff]   ;;  %v1018_v7 = vld [vmem:[%s1455_s4 + $0x38] sm:$0xff]  }
 0x17a   :  { %v355_v11 = vrot.slane %v354_v9, 1  ;;  %v371_v12 = vadd.f32 %v370_v10, %v369_v8  ;;  %v1019_v8 = vld [vmem:[%s1455_s4 + $0x40] sm:$0xff]   ;;  %v1021_v10 = vld [vmem:[%s1455_s4 + $0x50] sm:$0xff]  }
 0x17b   :  { %720 = vmatpush1.bf16.msra.mxu1 %v1013_v1 }
 0x17c   :  { %v372_v14 = vrot.slane %v371_v12, 1  ;;  %v356_v15 = vadd.f32 %v355_v11, %v354_v9  ;;  %721 = vmatprep.subr.bf16.mxu1 %v1054_v27  ;;  %v1020_v9 = vld [vmem:[%s1455_s4 + $0x48] sm:$0xff]   ;;  %v1022_v11 = vld [vmem:[%s1455_s4 + $0x58] sm:$0xff]  }
 0x17e   :  { %v373_v16 = vadd.f32 %v372_v14, %v371_v12  ;;  %v467_v12 = vsub.s32 1, %v1263_v39 }
 0x17f   :  { %722 = vmatpush1.bf16.msra.mxu1 %v1014_v3 }
 0x180   :  { %v375_v17 = vsel %vm374_vm12, %v356_v15, %v373_v16  ;;  %723 = vmatprep.subr.bf16.mxu1 %v1054_v27 }
 0x181   :  { %377 = vrot.lane.b32.xlu1 %v375_v17, %s1056_s1 }
 0x183   :  { %724 = vmatpush1.bf16.msra.mxu1 %v1015_v4 }
 0x184   :  { %725 = vmatprep.subr.bf16.mxu1 %v1054_v27 }
 0x187   :  { %726 = vmatpush1.bf16.msra.mxu1 %v1016_v5 }
 0x188   :  { %727 = vmatprep.subr.bf16.mxu1 %v1054_v27 }
 0x18b   :  { %728 = vmatpush1.bf16.msra.mxu1 %v1017_v6 }
 0x18c   :  { %729 = vmatprep.subr.bf16.mxu1 %v1054_v27 }
 0x18f   :  { %730 = vmatpush1.bf16.msra.mxu1 %v1018_v7 }
 0x190   :  { %731 = vmatprep.subr.bf16.mxu1 %v1054_v27 }
 0x193   :  { %732 = vmatpush1.bf16.msra.mxu1 %v1019_v8 }
 0x194   :  { %733 = vmatprep.subr.bf16.mxu1 %v1054_v27 }
 0x197   :  { %734 = vmatpush1.bf16.msra.mxu1 %v1020_v9 }
 0x198   :  { %735 = vmatprep.subr.bf16.mxu1 %v1054_v27 }
 0x19b   :  { %736 = vmatpush1.bf16.msra.mxu1 %v1021_v10 }
 0x19c   :  { %737 = vmatprep.subr.bf16.mxu1 %v1054_v27 }
 0x19f   :  { %738 = vmatpush1.bf16.msra.mxu1 %v1022_v11 }
 0x1f3   :  { %v378_v19 = vpop.permute.xlu1 %377 }
 0x1f4   :  { %v380_v20 = vadd.f32 %v378_v19, %v375_v17 }
 0x1f6   :  { %382 = vrot.lane.b32.xlu1 %v380_v20, %s1057_s11 }
 0x268   :  { %v383_v21 = vpop.permute.xlu1 %382 }
 0x269   :  { %v385_v22 = vadd.f32 %v383_v21, %v380_v20 }
 0x26b   :  { %387 = vrot.lane.b32.xlu0 %v385_v22, %s1058_s12 }
 0x2dd   :  { %v388_v23 = vpop.permute.xlu0 %387 }
 0x2de   :  { %v390_v24 = vadd.f32 %v388_v23, %v385_v22 }
 0x2e0   :  { %392 = vrot.lane.b32.xlu1 %v390_v24, %s1059_s13 }
 0x352   :  { %v393_v25 = vpop.permute.xlu1 %392 }
 0x353   :  { %v395_v26 = vadd.f32 %v393_v25, %v390_v24 }
 0x355   :  { %v396_v29 = vmul.f32 0.001953125, %v395_v26 }
 0x357   :  { %v397_v30 = vmul.f32 %v396_v29, %v396_v29 }
 0x359   :  { %v399_v31 = vrot.slane %v397_v30, 7 }
 0x35b   :  { %v401_v32 = vsub.f32 %v396_v29, %v399_v31 }
 0x35d   :  { %v403_v33 = vadd.f32 1e-05, %v401_v32 }
 0x35f   :  { %1024 = vrsqrt.f32 %v403_v33 }
 0x369   :  { %v1025_v42 = vpop.eup %1024 }
 0x36a   :  { %v412_v43 = vrot.slane %v1025_v42, %v1266_v40  ;;  %v529_v42 = vld [vmem:[#allocation2] sm:$0xf] }
 0x36c   :  { %v413_v45 = vcombine.high %v412_v43, %v412_v43 }
 0x36e   :  { %v420_v47 = vrot.slane %v413_v45, %v1266_v40 }
 0x370   :  { %v422_v48 = vmul.f32 %v420_v47, %v402_v46  ;;  %v533_v46 = vld [vmem:[#allocation2 + $0x8] sm:$0x1] }
 0x372   :  { %v424_v50 = vmul.f32 %v422_v48, %v396_v29 }
 0x374   :  { %v425_v52 = vsub.f32 %v423_v49, %v424_v50 }
 0x376   :  { %v430_v54 = vrot.slane %v425_v52, %v1277_v51  ;;  %v536_v52 = vld [vmem:[#allocation2 + $0xc] sm:$0xf] }
 0x378   :  { %v432_v55 = vsel %vm374_vm12, %v422_v48, %v430_v54  ;;  %v540_v54 = vld [vmem:[#allocation2 + $0x14] sm:$0x1] }
 0x379   :  { %434 = vrot.lane.b32.xlu0 %v432_v55, %s1061_s18 }
 0x3eb   :  { %v435_v56 = vpop.permute.xlu0 %434 }
 0x3ec   :  { %v438_v57 = vsel %vm437_vm13, %v432_v55, %v435_v56 }
 0x3ed   :  { %440 = vrot.lane.b32.xlu1 %v438_v57, %s1062_s2 }
 0x45f   :  { %v441_v59 = vpop.permute.xlu1 %440 }
 0x460   :  { %v444_v60 = vsel %vm443_vm14, %v438_v57, %v441_v59 }
 0x461   :  { %446 = vrot.lane.b32.xlu0 %v444_v60, %s1063_s3 }
 0x4d3   :  { %v447_v61 = vpop.permute.xlu0 %446 }
 0x4d4   :  { %v450_v62 = vsel %vm449_vm15, %v444_v60, %v447_v61 }
 0x4d5   :  { %452 = vrot.lane.b32.xlu1 %v450_v62, %s1064_s19 }
 0x547   :  { %v453_v14 = vpop.permute.xlu1 %452 }
 0x548   :  { %v456_v15 = vsel %vm455_vm0, %v450_v62, %v453_v14 }
 0x549   :  { %v460_v16 = vrot.slane %v456_v15, %v1277_v51  ;;  %v468_v17 = vrot.slane %v456_v15, %v467_v12 }
 0x54b   :  { %v461_v19 = vmul.f32 %v460_v16, %v1230_v41  ;;  %v462_v20 = vmul.f32 %v460_v16, %v1234_v44  ;;  %v463_v21 = vmul.f32 %v460_v16, %v1244_v53  ;;  %v464_v27 = vmul.f32 %v460_v16, %v1250_v58 }
 0x54d   :  { %v469_v22 = vadd.f32 %v468_v17, %v461_v19  ;;  %v470_v23 = vadd.f32 %v468_v17, %v462_v20  ;;  %v471_v24 = vadd.f32 %v468_v17, %v463_v21  ;;  %v472_v25 = vadd.f32 %v468_v17, %v464_v27 }
 0x54f   :  { %v473_v26 = vmax.f32 %v469_v22, 0.0  ;;  %v474_v29 = vmax.f32 %v470_v23, 0.0  ;;  %v475_v30 = vmax.f32 %v471_v24, 0.0  ;;  %v476_v31 = vmax.f32 %v472_v25, 0.0 }
 0x551   :  { %v972_v32 = vpack.c.bf16 %v473_v26, %v473_v26  ;;  %v973_v33 = vpack.c.bf16 %v474_v29, %v474_v29  ;;  %v974_v34 = vpack.c.bf16 %v475_v30, %v475_v30  ;;  %v975_v35 = vpack.c.bf16 %v476_v31, %v476_v31 }
 0x553   :  { %v490_v37 = vshrl.u32 %v972_v32, 16  ;;  %v498_v41 = vshrl.u32 %v973_v33, 16  ;;  %v507_v38 = vshrl.u32 %v974_v34, 16  ;;  %v515_v44 = vshrl.u32 %v975_v35, 16 }
 0x554   :  { %v493_v43 = vshll.u32 %v972_v32, 16  ;;  %v501_v45 = vshll.u32 %v973_v33, 16  ;;  %v510_v48 = vshll.u32 %v974_v34, 16  ;;  %v518_v50 = vshll.u32 %v975_v35, 16 }
 0x555   :  { %v492_v53 = vrot.slane %v490_v37, 7  ;;  %v500_v58 = vrot.slane %v498_v41, 7  ;;  %v509_v47 = vrot.slane %v507_v38, 7  ;;  %v517_v49 = vrot.slane %v515_v44, 7 }
 0x557   :  { %v495_v55 = vor.u32 %v493_v43, %v492_v53  ;;  %v496_v56 = vrot.slane %v492_v53, 4  ;;  %v503_v57 = vor.u32 %v501_v45, %v500_v58  ;;  %v505_v59 = vrot.slane %v500_v58, 4 }
 0x558   :  { %v512_v60 = vor.u32 %v510_v48, %v509_v47  ;;  %v513_v61 = vrot.slane %v509_v47, 4  ;;  %v520_v62 = vor.u32 %v518_v50, %v517_v49  ;;  %v522_v63 = vrot.slane %v517_v49, 4 }
 0x559   :  { %v504_v0 = vsel %vm1152_vm7, %v496_v56, %v503_v57  ;;  %v530_v1 = vsel %vm1161_vm8, %v495_v55, %v529_v42  ;;  %v534_v3 = vsel %vm1111_vm2, %v505_v59, %v533_v46 }
 0x55a   :  { %v521_v4 = vsel %vm1152_vm7, %v513_v61, %v520_v62  ;;  %531 = vst [vmem:[#allocation2] sm:$0xf] %v530_v1  ;;  %532 = vst.msk [vmem:[#allocation2 + $0x4] sm:$0xf] %vm103_vm6, %v504_v0  ;;  %v537_v5 = vsel %vm1161_vm8, %v512_v60, %v536_v52  ;;  %v541_v6 = vsel %vm1111_vm2, %v522_v63, %v540_v54 }
 0x55b   :  { %535 = vst [vmem:[#allocation2 + $0x8] sm:$0x1] %v534_v3  ;;  %538 = vst [vmem:[#allocation2 + $0xc] sm:$0xf] %v537_v5 }
 0x55c   :  { %539 = vst.msk [vmem:[#allocation2 + $0x10] sm:$0xf] %vm103_vm6, %v521_v4  ;;  %542 = vst [vmem:[#allocation2 + $0x14] sm:$0x1] %v541_v6 }
 0x561   :  { %v543_v7 = vld [vmem:[#allocation2] sm:$0xf]  ;;  %v544_v8 = vld [vmem:[#allocation2 + $0x4] sm:$0xf] }
 0x562   :  { %v549_v9 = vld [vmem:[#allocation2] sm:$0xe]  ;;  %v948_v10 = vcombine.low %v543_v7, %v544_v8  ;;  %v1007_v28 = vld [vmem:[#allocation2 + $0x8] ss:$0 sps:$4 sm:$0x11]  }
 0x563   :  { %v952_v11 = vcombine.low %v549_v9, %v544_v8  ;;  %v545_v14 = vld [vmem:[#allocation2 + $0xc] sm:$0xf]  ;;  %v546_v15 = vld [vmem:[#allocation2 + $0x10] sm:$0xf]  ;;  %v602_v16 = vrot.slane %v1007_v28, 1  ;;  %v575_v21 = vshll.u32 %v1007_v28, 16 }
 0x564   :  { %v949_v17 = vcombine.low %v545_v14, %v546_v15  ;;  %v1010_v19 = vld [vmem:[#allocation2 + $0x14] ss:$0 sps:$4 sm:$0x11]   ;;  %v570_v36 = vshll.u32 %v948_v10, 16  ;;  %v550_v2 = vld [vmem:[#allocation2 + $0xc] sm:$0xe] }
 0x565   :  { %v601_v20 = vrot.slane %v952_v11, 1  ;;  %v587_v22 = vshll.u32 %v1010_v19, 16  ;;  %v568_v23 = vshrl.u32 %v948_v10, 16  ;;  %v953_v26 = vcombine.low %v550_v2, %v546_v15 }
 0x566   :  { %v582_v27 = vshll.u32 %v949_v17, 16  ;;  %v572_v24 = vrot.slane %v570_v36, 1  ;;  %v605_v29 = vrot.slane %v1010_v19, 1  ;;  %v580_v30 = vshrl.u32 %v949_v17, 16 }
 0x567   :  { %v603_v25 = vsel %vm179_vm10, %v601_v20, %v602_v16  ;;  %v577_v33 = vrot.slane %v575_v21, 1  ;;  %v604_v34 = vrot.slane %v953_v26, 1  ;;  %v589_v37 = vrot.slane %v587_v22, 1 }
 0x568   :  { %966 = vmatprep.mubr.msk.bf16.mxu1 %vm186_vm11, %v603_v25  ;;  %v584_v31 = vrot.slane %v582_v27, 1  ;;  %v573_v32 = vor.u32 %v572_v24, %v568_v23 }
 0x569   :  { %v606_v38 = vsel %vm179_vm10, %v604_v34, %v605_v29 }
 0x56a   :  { %v585_v35 = vor.u32 %v584_v31, %v580_v30  ;;  %v578_v41 = vsel %vm144_vm9, %v573_v32, %v577_v33 }
 0x56b   :  { %591 = vrot.lane.b32.xlu0 %v578_v41, %s1055_s23 }
 0x56c   :  { %v590_v44 = vsel %vm144_vm9, %v585_v35, %v589_v37 }
 0x56d   :  { %593 = vrot.lane.b32.xlu1 %v590_v44, %s1055_s23 }
 0x5dd   :  { %v592_v42 = vpop.permute.xlu0 %591 }
 0x5de   :  { %v608_v53 = vsel %vm186_vm11, %v948_v10, %v592_v42 }
 0x5df   :  { %748 = vmatmul.mubr.bf16.vlgmr.msra.gmra.mrb[0].mxu1 %v608_v53  ;;  %v594_v43 = vpop.permute.xlu1 %593  ;;  %v821_v53 = vld [vmem:[%s1456_s5] sm:$0x1]  ;;  %s1065_s5 = smov [#allocation3]  }
 0x5e0   :  { %967 = vmatprep.mubr.msk.bf16.mxu1 %vm186_vm11, %v606_v38  ;;  %v611_v58 = vsel %vm186_vm11, %v949_v17, %v594_v43 }
 0x5e7   :  { %756 = vmatmul.mubr.bf16.gmra.mrb[4].mxu1 %v611_v58 }
 0x6b2   :  { %v1368_v45 = vpop.f32.mrb[0].mxu1 }
 0x6b3   :  { %v777_v46 = vmul.f32 %v1368_v45, %v1368_v45  ;;  %v751_v47 = vpop.f32.mrb[1].mxu1  ;;  %v764_v49 = vsel %vm186_vm11, %v1368_v45, 0.0 }
 0x6b4   :  { %v1372_v48 = vpop.f32.mrb[2].mxu1 }
 0x6b5   :  { %v765_v50 = vsel %vm186_vm11, %v1372_v48, 0.0  ;;  %v778_v52 = vmul.f32 %v1372_v48, %v1372_v48  ;;  %v754_v54 = vpop.f32.mrb[3].mxu1  ;;  %v781_v56 = vsel %vm186_vm11, %v777_v46, 0.0  ;;  %v842_v46 = vld [vmem:[%s1457_s6] sm:$0x1]  ;;  %s909_s6 = sshll.u32 %s1065_s5, 4  ;;  %s910_s6 = int_to_ptr.vmem [resolvable:$true] %s909_s6 }
 0x6b6   :  { %v766_v55 = vadd.f32 %v765_v50, %v764_v49  ;;  %p1035_p1 = scmp.lt.s32.totalorder %s910_s6, %s910_s6 }
 0x6b7   :  { %v782_v57 = vsel %vm186_vm11, %v778_v52, 0.0 }
 0x6b8   :  { %v783_v59 = vadd.f32 %v782_v57, %v781_v56 }
 0x6ba   :  { %v1382_v60 = vpop.f32.mrb[4].mxu1 }
 0x6bb   :  { %v767_v61 = vsel %vm186_vm11, %v1382_v60, 0.0  ;;  %v779_v62 = vmul.f32 %v1382_v60, %v1382_v60  ;;  %v759_v63 = vpop.f32.mrb[5].mxu1 }
 0x6bc   :  { %v768_v0 = vadd.f32 %v767_v61, %v766_v55  ;;  %v1388_v1 = vpop.f32.mrb[6].mxu1 }
 0x6bd   :  { %v784_v3 = vsel %vm186_vm11, %v779_v62, 0.0  ;;  %v769_v4 = vsel %vm186_vm11, %v1388_v1, 0.0  ;;  %v780_v5 = vmul.f32 %v1388_v1, %v1388_v1  ;;  %v762_v6 = vpop.f32.mrb[7].mxu1 }
 0x6be   :  { %v785_v7 = vadd.f32 %v784_v3, %v783_v59  ;;  %v770_v8 = vadd.f32 %v769_v4, %v768_v0 }
 0x6bf   :  { %v786_v9 = vsel %vm186_vm11, %v780_v5, 0.0 }
 0x6c0   :  { %v771_v10 = vrot.slane %v770_v8, 4  ;;  %v787_v28 = vadd.f32 %v786_v9, %v785_v7 }
 0x6c2   :  { %v772_v11 = vadd.f32 %v771_v10, %v770_v8  ;;  %v788_v14 = vrot.slane %v787_v28, 4 }
 0x6c4   :  { %v773_v15 = vrot.slane %v772_v11, 2  ;;  %v789_v16 = vadd.f32 %v788_v14, %v787_v28 }
 0x6c6   :  { %v774_v17 = vadd.f32 %v773_v15, %v772_v11  ;;  %v790_v19 = vrot.slane %v789_v16, 2 }
 0x6c8   :  { %v775_v36 = vrot.slane %v774_v17, 1  ;;  %v791_v20 = vadd.f32 %v790_v19, %v789_v16 }
 0x6ca   :  { %v792_v21 = vrot.slane %v791_v20, 1  ;;  %v776_v2 = vadd.f32 %v775_v36, %v774_v17 }
 0x6cc   :  { %v793_v27 = vadd.f32 %v792_v21, %v791_v20 }
 0x6ce   :  { %v794_v22 = vsel %vm374_vm12, %v776_v2, %v793_v27 }
 0x6cf   :  { %796 = vrot.lane.b32.xlu0 %v794_v22, %s1056_s1 }
 0x741   :  { %v797_v23 = vpop.permute.xlu0 %796 }
 0x742   :  { %v799_v24 = vadd.f32 %v797_v23, %v794_v22 }
 0x744   :  { %801 = vrot.lane.b32.xlu1 %v799_v24, %s1057_s11 }
 0x7b6   :  { %v802_v25 = vpop.permute.xlu1 %801 }
 0x7b7   :  { %v804_v26 = vadd.f32 %v802_v25, %v799_v24 }
 0x7b9   :  { %806 = vrot.lane.b32.xlu0 %v804_v26, %s1058_s12 }
 0x82b   :  { %v807_v29 = vpop.permute.xlu0 %806 }
 0x82c   :  { %v809_v30 = vadd.f32 %v807_v29, %v804_v26 }
 0x82e   :  { %811 = vrot.lane.b32.xlu1 %v809_v30, %s1059_s13 }
 0x8a0   :  { %v812_v31 = vpop.permute.xlu1 %811 }
 0x8a1   :  { %v814_v32 = vadd.f32 %v812_v31, %v809_v30 }
 0x8a3   :  { %v815_v33 = vmul.f32 0.001953125, %v814_v32 }
 0x8a5   :  { %v816_v34 = vmul.f32 %v815_v33, %v815_v33 }
 0x8a7   :  { %v818_v35 = vrot.slane %v816_v34, 7 }
 0x8a9   :  { %v820_v37 = vsub.f32 %v815_v33, %v818_v35 }
 0x8ab   :  { %v822_v41 = vadd.f32 1e-05, %v820_v37 }
 0x8ad   :  { %1026 = vrsqrt.f32 %v822_v41 }
 0x8b7   :  { %v1027_v38 = vpop.eup %1026 }
 0x8b8   :  { %v831_v44 = vrot.slane %v1027_v38, %v1266_v40 }
 0x8ba   :  { %v832_v42 = vcombine.high %v831_v44, %v831_v44 }
 0x8bc   :  { %v839_v43 = vrot.slane %v832_v42, %v1266_v40 }
 0x8be   :  { %v841_v58 = vmul.f32 %v839_v43, %v821_v53 }
 0x8c0   :  { %v843_v47 = vmul.f32 %v841_v58, %v815_v33 }
 0x8c2   :  { %v844_v49 = vsub.f32 %v842_v46, %v843_v47 }
 0x8c4   :  { %v849_v50 = vrot.slane %v844_v49, %v1277_v51 }
 0x8c6   :  { %v851_v52 = vsel %vm374_vm12, %v841_v58, %v849_v50 }
 0x8c7   :  { %853 = vrot.lane.b32.xlu0 %v851_v52, %s1061_s18 }
 0x939   :  { %v854_v54 = vpop.permute.xlu0 %853 }
 0x93a   :  { %v856_v55 = vsel %vm437_vm13, %v851_v52, %v854_v54 }
 0x93b   :  { %858 = vrot.lane.b32.xlu1 %v856_v55, %s1062_s2 }
 0x9ad   :  { %v859_v56 = vpop.permute.xlu1 %858 }
 0x9ae   :  { %v861_v40 = vsel %vm443_vm14, %v856_v55, %v859_v56 }
 0x9af   :  { %863 = vrot.lane.b32.xlu0 %v861_v40, %s1063_s3 }
 0xa21   :  { %v864_v57 = vpop.permute.xlu0 %863 }
 0xa22   :  { %v866_v59 = vsel %vm449_vm15, %v861_v40, %v864_v57 }
 0xa23   :  { %868 = vrot.lane.b32.xlu1 %v866_v59, %s1064_s19  ;;  %s1030_s19 = scalar_lea.vmem %s910_s6, 512 }
 0xa24   :  { %p1031_p0 = scmp.ne.s32.totalorder %s910_s6, %s1030_s19  ;;  %p1036_p2 = scmp.lt.s32.totalorder %s1030_s19, %s1030_s19 }
 0xa26   :  { %p1037_p3 = por %p1036_p2, %p1035_p1 }
 0xa28   :  { %p1038_p4 = pnand %p1037_p3, %p1031_p0 }
 0xa95   :  { %v869_v61 = vpop.permute.xlu1 %868 }
 0xa96   :  { %v871_v62 = vsel %vm455_vm0, %v866_v59, %v869_v61 }
 0xa97   :  { %v875_v63 = vrot.slane %v871_v62, %v1277_v51  ;;  %v883_v0 = vrot.slane %v871_v62, %v467_v12  ;;  %v1028_v51 = vld [vmem:[%s1451_s0] sm:$0xff]  ;;  %v1029_v12 = vld [vmem:[%s1451_s0 + $0x8] sm:$0xff] }
 0xa99   :  { %v876_v3 = vmul.f32 %v875_v63, %v1368_v45  ;;  %v877_v4 = vmul.f32 %v875_v63, %v1372_v48  ;;  %v878_v5 = vmul.f32 %v875_v63, %v1382_v60  ;;  %v879_v6 = vmul.f32 %v875_v63, %v1388_v1 }
 0xa9b   :  { %v884_v7 = vadd.f32 %v883_v0, %v876_v3  ;;  %v885_v8 = vadd.f32 %v883_v0, %v877_v4  ;;  %v886_v9 = vadd.f32 %v883_v0, %v878_v5  ;;  %v887_v10 = vadd.f32 %v883_v0, %v879_v6 }
 0xa9d   :  { %v892_v39 = vadd.f32 %v1028_v51, %v884_v7  ;;  %v893_v45 = vadd.f32 %v1029_v12, %v885_v8  ;;  %v894_v48 = vadd.f32 %v886_v9, %v1130_v13  ;;  %v895_v60 = vadd.f32 %v887_v10, %v1137_v18 }
 0xa9f   :  { %v896_v1 = vmax.f32 %v892_v39, 0.0  ;;  %v897_v28 = vmax.f32 %v893_v45, 0.0  ;;  %v898_v11 = vmax.f32 %v894_v48, 0.0  ;;  %v899_v14 = vmax.f32 %v895_v60, 0.0 }
 0xaa1   :  { %900 = vst.msk [vmem:[#allocation3] sm:$0xff] %vm186_vm11, %v896_v1  ;;  %901 = vst.msk [vmem:[#allocation3 + $0x8] sm:$0xff] %vm186_vm11, %v897_v28 }
 0xaa2   :  { %902 = vst.msk [vmem:[#allocation3 + $0x10] sm:$0xff] %vm186_vm11, %v898_v11  ;;  %903 = vst.msk [vmem:[#allocation3 + $0x18] sm:$0xff] %vm186_vm11, %v899_v14 }
 0xaa3   :  { %1041 = shalt.err (!%p1038_p4)
}
 0xaa4   :  { %s1042_s29 = scalar_lea.hbm %s1458_s7, 512 }
 0xaa5   :  { %p1043_p5 = scmp.ne.s32.totalorder %s1458_s7, %s1042_s29  ;;  %p1046_p6 = scmp.lt.u32.totalorder %s1042_s29, %s1458_s7 }
 0xaa7   :  { %p1048_p7 = pnand %p1046_p6, %p1043_p5 }
 0xaa9   :  { %1051 = shalt.err (!%p1048_p7)
}
 0xaaa   :  { %s1066_s14 = smov 128  }
 0xaab   :  { %915 = dma.vmem_to_hbm [thread:$0]  %s910_s6, 512, %s1458_s7, [#allocation4], %s1066_s14, %s1066_s14, %s1062_s2  }
 0xaac   :  { %1052 = dma.done.wait [#allocation4], 512  }
 0xaad   :  { %1053 = vsyncadd [#allocation4], 4294966784 }
 0xaae   :  { %919 = vsyncpa [#allocation4], 1 }

</bundles_post_ra>
